<compile_context>
chip_gen: v7x
topology: tpu7x:2x2x1
jax: 0.10.0
libtpu: 0.0.40
codegen_flags: <defaults>
</compile_context>

<pallas_src>
import functools

import jax
import jax.numpy as jnp
from jax.experimental import pallas as pl
from jax.experimental.pallas import tpu as pltpu

SCALE = 256.0      # self.scale
DROPRATE = 0.0     # registered buffer 'droprate' (fixed at 0.0 at init)
EPS = 1e-12


def _level_cross_kernel(x_ref, heat_ref, samp_ref, acc_ref, *, c_tile, H):
    # x_ref:    (c_tile * H, W) float32 -- c_tile channels of one batch element
    # heat_ref: (H, W) float32
    # samp_ref: (H, W) float32
    # acc_ref:  (H, W) int32   -- channel-summed |diff| accumulator
    c = pl.program_id(1)

    @pl.when(c == 0)
    def _init():
        acc_ref[...] = jnp.zeros_like(acc_ref)

    x = x_ref[...]                                    # (c_tile*H, W) f32
    # quant = (img * 256).to(torch.int): float->int32 truncates toward zero.
    quant = (x * SCALE).astype(jnp.int32)

    # Previous pixel in flattened row-major (H*W) order, per channel:
    #   w > 0  -> quant[row, w-1]        (lane shift along W)
    #   w == 0 -> quant[row-1, W-1]      (previous row's last column)
    prev_w = jnp.roll(quant, shift=1, axis=1)         # [r, 0] <- quant[r, W-1]
    prev_hw = jnp.roll(prev_w, shift=1, axis=0)       # [r, 0] <- quant[r-1, W-1]
    w_idx = jax.lax.broadcasted_iota(jnp.int32, quant.shape, dimension=1)
    prev = jnp.where(w_idx == 0, prev_hw, prev_w)
    d = jnp.abs(quant - prev)                         # (c_tile*H, W) i32
    # (Wrap-around rows only pollute (h==0, w==0) positions, which feed
    #  hmap[0, 0] -- forced to zero below, matching the reference's left pad.)

    # Channel reduction: plain adds of (H, W) slabs.
    part = d[0:H, :]
    for ci in range(1, c_tile):
        part = part + d[ci * H:(ci + 1) * H, :]
    acc_ref[...] += part

    @pl.when(c == pl.num_programs(1) - 1)
    def _finalize():
        dsum = acc_ref[...].astype(jnp.float32)       # (H, W)
        # Only the single (h==0, w==0) element is the zero-pad of the reference.
        h_idx = jax.lax.broadcasted_iota(jnp.int32, dsum.shape, dimension=0)
        wi = jax.lax.broadcasted_iota(jnp.int32, dsum.shape, dimension=1)
        hmap = jnp.where((h_idx == 0) & (wi == 0), 0.0, dsum)

        hmax = jnp.max(hmap)
        # hmin == 0 by construction (all diffs >= 0, hmap[0,0] == 0), so the
        # min reduction is dropped: (hmap - hmin)/(hmax - hmin + eps) is
        # exactly hmap / (hmax + eps).
        # TODO(synk): normalize_min_max is not defined in the source; assumed
        # to be per-sample (x - min) / (max - min) with an eps guard.
        heat_ref[...] = hmap / (hmax + EPS)
        # sample_map: 1 where hmap > droprate * hmap_max, else 0 (strict '>').
        samp_ref[...] = jnp.where(hmap > DROPRATE * hmax, 1.0, 0.0).astype(
            jnp.float32
        )


def _pick_c_tile(C, H, W, budget_bytes=8 << 20):
    """Largest channel tile whose double-buffered input block fits the budget."""
    per_channel = H * W * 4                           # f32 bytes per channel slab
    if 2 * C * per_channel <= budget_bytes:
        return C                                      # whole channel extent fits
    max_ct = max(1, budget_bytes // (2 * per_channel))
    for ct in range(int(min(C - 1, max_ct)), 0, -1):
        # Must divide C and keep the block's sublane dim a multiple of 8.
        if C % ct == 0 and (ct * H) % 8 == 0:
            return ct
    return C                                          # fallback: no valid smaller tile


def level_cross(img):
    """img: (B, C, H, W) float.  Returns (heat_map, sample_map), each (B, 1, H, W) f32."""
    B, C, H, W = img.shape
    x2d = img.reshape(B, C * H, W).astype(jnp.float32)  # free contiguous reshape

    c_tile = _pick_c_tile(C, H, W)
    n_c = C // c_tile

    # Explicit VMEM budget from the actual tiles (2-deep pipelined input,
    # two 2-deep outputs, one accumulator), with 2x headroom, capped to fit
    # every generation's physical VMEM.
    in_tile = c_tile * H * W * 4
    out_tile = H * W * 4
    needed = 2 * in_tile + 2 * 2 * out_tile + out_tile
    vmem_limit = int(min(max(2 * needed, 8 << 20), 64 << 20))

    kernel = functools.partial(_level_cross_kernel, c_tile=c_tile, H=H)

    heat, samp = pl.pallas_call(
        kernel,
        out_shape=(
            jax.ShapeDtypeStruct((B, H, W), jnp.float32),
            jax.ShapeDtypeStruct((B, H, W), jnp.float32),
        ),
        grid_spec=pltpu.PrefetchScalarGridSpec(
            num_scalar_prefetch=0,
            grid=(B, n_c),
            in_specs=[
                pl.BlockSpec((None, c_tile * H, W), lambda b, c: (b, c, 0)),
            ],
            out_specs=(
                pl.BlockSpec((None, H, W), lambda b, c: (b, 0, 0)),
                pl.BlockSpec((None, H, W), lambda b, c: (b, 0, 0)),
            ),
            scratch_shapes=[pltpu.VMEM((H, W), jnp.int32)],
        ),
        compiler_params=pltpu.CompilerParams(
            dimension_semantics=("parallel", "arbitrary"),
            vmem_limit_bytes=vmem_limit,
        ),
    )(x2d)

    return heat.reshape(B, 1, H, W), samp.reshape(B, 1, H, W)


def _level_cross_reference(img):
    """Pure-JAX port of the PyTorch forward, for correctness checking."""
    B, C, H, W = img.shape
    quant = (img.astype(jnp.float32) * SCALE).astype(jnp.int32)
    lin = quant.reshape(B, C, H * W)
    d = jnp.abs(lin[..., 1:] - lin[..., :-1]).sum(axis=1, keepdims=True)
    hmap = jnp.pad(d, ((0, 0), (0, 0), (1, 0))).astype(jnp.float32)
    hmap = hmap.reshape(B, 1, H, W)
    hmax = hmap.max(axis=(-1, -2), keepdims=True)
    hmin = hmap.min(axis=(-1, -2), keepdims=True)
    heat = (hmap - hmin) / (hmax - hmin + EPS)
    samp = (hmap > DROPRATE * hmax).astype(jnp.float32)
    return heat, samp


if __name__ == "__main__":
    key = jax.random.PRNGKey(0)
    B, C, H, W = 2, 4, 16, 16
    img = jax.random.uniform(key, (B, C, H, W), dtype=jnp.float32)

    heat_map, sample_map = level_cross(img)
    jax.block_until_ready((heat_map, sample_map))

    assert heat_map.shape == (B, 1, H, W) and heat_map.dtype == jnp.float32
    assert sample_map.shape == (B, 1, H, W) and sample_map.dtype == jnp.float32

    heat_exp, samp_exp = _level_cross_reference(img)
    assert jnp.allclose(heat_map, heat_exp, atol=1e-6), "heat_map mismatch"
    assert jnp.allclose(sample_map, samp_exp), "sample_map mismatch"

    print("KERNEL_OK")
</pallas_src>

<mosaic_0001>
module attributes {stable_mosaic.version = 11 : i64} {
  func.func @_level_cross_kernel(%arg0: i32, %arg1: i32, %arg2: memref<1x64x16xf32, #tpu.memory_space<vmem>>, %arg3: memref<1x16x16xf32, #tpu.memory_space<vmem>>, %arg4: memref<1x16x16xf32, #tpu.memory_space<vmem>>, %arg5: memref<16x16xi32, #tpu.memory_space<vmem>>) attributes {dimension_semantics = [#tpu.dimension_semantics<parallel>, #tpu.dimension_semantics<arbitrary>], iteration_bounds = array<i64: 2, 1>, scalar_prefetch = 0 : i64, scratch_operands = 1 : i64, tpu.core_type = #tpu.core_type<tc>, window_params = [{transform_indices = @transform_0, window_bounds = array<i64: 1, 64, 16>}, {transform_indices = @transform_1, window_bounds = array<i64: 1, 16, 16>}, {transform_indices = @transform_2, window_bounds = array<i64: 1, 16, 16>}]} {
    %c0_i32 = arith.constant 0 : i32
    %0 = arith.cmpi eq, %arg1, %c0_i32 : i32
    %1 = arith.extui %0 : i1 to i32
    %c0_i32_0 = arith.constant 0 : i32
    %2 = arith.cmpi ne, %1, %c0_i32_0 : i32
    scf.if %2 {
      %c0_i32_10 = arith.constant 0 : i32
      %33 = vector.broadcast %c0_i32_10 : i32 to vector<16x16xi32>
      %c0_11 = arith.constant 0 : index
      %c0_12 = arith.constant 0 : index
      %34 = vector.load %arg5[%c0_11, %c0_12] : memref<16x16xi32, #tpu.memory_space<vmem>>, vector<16x16xi32>
      tpu.vector_store %arg5[%c0_11, %c0_12], %33 {strides = array<i32>} : memref<16x16xi32, #tpu.memory_space<vmem>>, vector<16x16xi32>,
    } else {
    }
    %c0 = arith.constant 0 : index
    %c0_1 = arith.constant 0 : index
    %c0_2 = arith.constant 0 : index
    %3 = vector.load %arg2[%c0, %c0_1, %c0_2] : memref<1x64x16xf32, #tpu.memory_space<vmem>>, vector<1x64x16xf32>
    %4 = vector.shape_cast %3 : vector<1x64x16xf32> to vector<64x16xf32>
    %cst = arith.constant 2.560000e+02 : f32
    %5 = vector.broadcast %cst : f32 to vector<64x16xf32>
    %6 = arith.mulf %4, %5 : vector<64x16xf32>
    %7 = arith.fptosi %6 : vector<64x16xf32> to vector<64x16xi32>
    %8 = vector.extract_strided_slice %7 {offsets = [0, 15], sizes = [64, 1], strides = [1, 1]} : vector<64x16xi32> to vector<64x1xi32>
    %9 = vector.extract_strided_slice %7 {offsets = [0, 0], sizes = [64, 15], strides = [1, 1]} : vector<64x16xi32> to vector<64x15xi32>
    %10 = tpu.concatenate %8, %9 in 1 : vector<64x1xi32>, vector<64x15xi32> -> vector<64x16xi32>
    %11 = vector.extract_strided_slice %10 {offsets = [63, 0], sizes = [1, 16], strides = [1, 1]} : vector<64x16xi32> to vector<1x16xi32>
    %12 = vector.extract_strided_slice %10 {offsets = [0, 0], sizes = [63, 16], strides = [1, 1]} : vector<64x16xi32> to vector<63x16xi32>
    %13 = tpu.concatenate %11, %12 in 0 : vector<1x16xi32>, vector<63x16xi32> -> vector<64x16xi32>
    %14 = tpu.iota {dimensions = array<i32: 1>} : vector<64x16xi32>
    %c0_i32_3 = arith.constant 0 : i32
    %15 = vector.broadcast %c0_i32_3 : i32 to vector<64x16xi32>
    %16 = arith.cmpi eq, %14, %15 : vector<64x16xi32>
    %17 = arith.select %16, %13, %10 : vector<64x16xi1>, vector<64x16xi32>
    %18 = arith.subi %7, %17 : vector<64x16xi32>
    %19 = math.absi %18 : vector<64x16xi32>
    %20 = vector.extract_strided_slice %19 {offsets = [0, 0], sizes = [16, 16], strides = [1, 1]} : vector<64x16xi32> to vector<16x16xi32>
    %21 = vector.extract_strided_slice %19 {offsets = [16, 0], sizes = [16, 16], strides = [1, 1]} : vector<64x16xi32> to vector<16x16xi32>
    %22 = arith.addi %20, %21 : vector<16x16xi32>
    %23 = vector.extract_strided_slice %19 {offsets = [32, 0], sizes = [16, 16], strides = [1, 1]} : vector<64x16xi32> to vector<16x16xi32>
    %24 = arith.addi %22, %23 : vector<16x16xi32>
    %25 = vector.extract_strided_slice %19 {offsets = [48, 0], sizes = [16, 16], strides = [1, 1]} : vector<64x16xi32> to vector<16x16xi32>
    %26 = arith.addi %24, %25 : vector<16x16xi32>
    %c0_4 = arith.constant 0 : index
    %c0_5 = arith.constant 0 : index
    %27 = vector.load %arg5[%c0_4, %c0_5] : memref<16x16xi32, #tpu.memory_space<vmem>>, vector<16x16xi32>
    %28 = arith.addi %27, %26 : vector<16x16xi32>
    %c0_6 = arith.constant 0 : index
    %c0_7 = arith.constant 0 : index
    %29 = vector.load %arg5[%c0_6, %c0_7] : memref<16x16xi32, #tpu.memory_space<vmem>>, vector<16x16xi32>
    tpu.vector_store %arg5[%c0_6, %c0_7], %28 {strides = array<i32>} : memref<16x16xi32, #tpu.memory_space<vmem>>, vector<16x16xi32>,
    %c0_i32_8 = arith.constant 0 : i32
    %30 = arith.cmpi eq, %arg1, %c0_i32_8 : i32
    %31 = arith.extui %30 : i1 to i32
    %c0_i32_9 = arith.constant 0 : i32
    %32 = arith.cmpi ne, %31, %c0_i32_9 : i32
    scf.if %32 {
      %c0_10 = arith.constant 0 : index
      %c0_11 = arith.constant 0 : index
      %33 = vector.load %arg5[%c0_10, %c0_11] : memref<16x16xi32, #tpu.memory_space<vmem>>, vector<16x16xi32>
      %34 = arith.sitofp %33 : vector<16x16xi32> to vector<16x16xf32>
      %35 = tpu.iota {dimensions = array<i32: 0>} : vector<16x16xi32>
      %36 = tpu.iota {dimensions = array<i32: 1>} : vector<16x16xi32>
      %c0_i32_12 = arith.constant 0 : i32
      %37 = vector.broadcast %c0_i32_12 : i32 to vector<16x16xi32>
      %38 = arith.cmpi eq, %35, %37 : vector<16x16xi32>
      %c0_i32_13 = arith.constant 0 : i32
      %39 = vector.broadcast %c0_i32_13 : i32 to vector<16x16xi32>
      %40 = arith.cmpi eq, %36, %39 : vector<16x16xi32>
      %41 = arith.andi %38, %40 : vector<16x16xi1>
      %cst_14 = arith.constant 0.000000e+00 : f32
      %42 = vector.broadcast %cst_14 : f32 to vector<16x16xf32>
      %43 = arith.select %41, %42, %34 : vector<16x16xi1>, vector<16x16xf32>
      %44 = vector.shape_cast %43 : vector<16x16xf32> to vector<1x16x16xf32>
      %cst_15 = arith.constant dense<0xFF800000> : vector<1xf32>
      %45 = vector.multi_reduction <maximumf>, %44, %cst_15 [1, 2] : vector<1x16x16xf32> to vector<1xf32>
      %46 = vector.shape_cast %45 : vector<1xf32> to vector<1x1x1xf32>
      %47 = vector.extract %46[0, 0, 0] : f32 from vector<1x1x1xf32>
      %cst_16 = arith.constant 9.99999996E-13 : f32
      %48 = arith.addf %47, %cst_16 : f32
      %49 = vector.broadcast %48 : f32 to vector<16x16xf32>
      %50 = arith.divf %43, %49 : vector<16x16xf32>
      %c0_17 = arith.constant 0 : index
      %c0_18 = arith.constant 0 : index
      %c0_19 = arith.constant 0 : index
      %51 = vector.load %arg3[%c0_17, %c0_18, %c0_19] : memref<1x16x16xf32, #tpu.memory_space<vmem>>, vector<1x16x16xf32>
      %52 = vector.shape_cast %51 : vector<1x16x16xf32> to vector<16x16xf32>
      %53 = vector.shape_cast %50 : vector<16x16xf32> to vector<1x16x16xf32>
      tpu.vector_store %arg3[%c0_17, %c0_18, %c0_19], %53 {strides = array<i32>} : memref<1x16x16xf32, #tpu.memory_space<vmem>>, vector<1x16x16xf32>,
      %cst_20 = arith.constant 0.000000e+00 : f32
      %54 = arith.mulf %cst_20, %47 : f32
      %55 = vector.broadcast %54 : f32 to vector<16x16xf32>
      %56 = arith.cmpf ogt, %43, %55 : vector<16x16xf32>
      %cst_21 = arith.constant 1.000000e+00 : f32
      %cst_22 = arith.constant 0.000000e+00 : f32
      %57 = vector.broadcast %cst_21 : f32 to vector<16x16xf32>
      %58 = vector.broadcast %cst_22 : f32 to vector<16x16xf32>
      %59 = arith.select %56, %57, %58 : vector<16x16xi1>, vector<16x16xf32>
      %c0_23 = arith.constant 0 : index
      %c0_24 = arith.constant 0 : index
      %c0_25 = arith.constant 0 : index
      %60 = vector.load %arg4[%c0_23, %c0_24, %c0_25] : memref<1x16x16xf32, #tpu.memory_space<vmem>>, vector<1x16x16xf32>
      %61 = vector.shape_cast %60 : vector<1x16x16xf32> to vector<16x16xf32>
      %62 = vector.shape_cast %59 : vector<16x16xf32> to vector<1x16x16xf32>
      tpu.vector_store %arg4[%c0_23, %c0_24, %c0_25], %62 {strides = array<i32>} : memref<1x16x16xf32, #tpu.memory_space<vmem>>, vector<1x16x16xf32>,
    } else {
    }
    return
  }
  func.func @transform_0(%arg0: i32, %arg1: i32) -> (i32, i32, i32) {
    %c0_i32 = arith.constant 0 : i32
    %c0_i32_0 = arith.constant 0 : i32
    return %arg0, %arg1, %c0_i32 : i32, i32, i32
  }
  func.func @transform_1(%arg0: i32, %arg1: i32) -> (i32, i32, i32) {
    %c0_i32 = arith.constant 0 : i32
    %c0_i32_0 = arith.constant 0 : i32
    %c0_i32_1 = arith.constant 0 : i32
    return %arg0, %c0_i32, %c0_i32_0 : i32, i32, i32
  }
  func.func @transform_2(%arg0: i32, %arg1: i32) -> (i32, i32, i32) {
    %c0_i32 = arith.constant 0 : i32
    %c0_i32_0 = arith.constant 0 : i32
    %c0_i32_1 = arith.constant 0 : i32
    return %arg0, %c0_i32, %c0_i32_0 : i32, i32, i32
  }
}

</mosaic_0001>

<bundles_post_ra>
// kernel: tpu_custom_call.1
= control target key start
LH: loop header
LB: loop body
LE: loop exit
PB: predicated region body
PF: predicated region fallthrough
CT: control target
= control target key end

     0   :  { %8 = vsyncpa [#allocation4], 0  ;;  %s1036_s0 = inlined_call_operand.vmem [shape: f32[2,64,16], index: 0, kind: input, shape index: {}]   ;;  %s1037_s1 = inlined_call_operand.hbm [shape: f32[2,16,16], index: 1, kind: output, shape index: {0}]   ;;  %s1038_s2 = inlined_call_operand.hbm [shape: f32[2,16,16], index: 2, kind: output, shape index: {1}]  }
   0x1   :  { %10 = vsyncpa [#allocation4 + $0x1], 0 }
   0x2   :  { %11 = vsyncpa [#allocation6], 0 }
   0x3   :  { %13 = vsyncpa [#allocation6 + $0x1], 0  ;;  %s761_s9 = smov 0   ;;  %s763_s10 = smov 0  }
   0x4   :  { %s765_s11 = smov 0   ;;  %s767_s12 = smov 0  }
   0x5   :  { %s769_s13 = smov 0   ;;  %s771_s14 = smov 0  }
   0x6 LB: > { %s512_s15 = sadd.s32 4294967295, %s736_s14   ;;  %s513_s16 = sadd.s32 4294967294, %s736_s14   ;;  %s736_s14 = sphi %s771_s14, %s19_s14   ;;  %s732_s13 = sphi %s769_s13, %s1045_s13   ;;  %s728_s12 = sphi %s767_s12, %s1044_s12   ;;  %s724_s11 = sphi %s765_s11, %s1043_s11   ;;  %s720_s10 = sphi %s763_s10, %s1042_s10   ;;  %s716_s9 = sphi %s761_s9, %s1041_s9  }
   0x7   : > { %s31_s17 = sadd.s32 1, %s732_s13  ;;  %s66_s18 = sadd.s32 1, %s724_s11 }
   0x8   : > { %p33_p0 = scmp.ge.s32.totalorder %s31_s17, 2  ;;  %p76_p1 = scmp.ne.s32.totalorder %s724_s11, %s720_s10 }
   0x9   : > { %p77_p2 = scmp.eq.s32.totalorder %s512_s15, 1  ;;  %p82_p3 = scmp.ne.s32.totalorder %s720_s10, %s716_s9 }
   0xa   : > { %s1047_s17 = smov (%p33_p0, %s31_s17), 0  ;;  %p83_p5 = scmp.eq.s32.totalorder %s513_s16, 1 }
   0xb   : > { %p801_p4 = por %p77_p2, %p76_p1  ;;  %s63_s20 = ssub.s32 %s732_s13, %s1047_s17 }
   0xc   : > { %p516_p6 = scmp.ge.s32.totalorder %s736_s14, 1  ;;  %p64_p7 = scmp.eq.s32.totalorder %s63_s20, 0 }
   0xd   : > { %p808_p8 = por %p83_p5, %p82_p3  ;;  %p140_p9 = scmp.lt.s32.totalorder %s736_s14, 3 }
   0xe   : > { %s814_s22 = scalar_select %p64_p7, %s724_s11, %s66_s18  }
   0xf   : > { %p141_p10 = pnand %p516_p6, %p140_p9 }
  0x10   : > { %p172_p11 = scmp.lt.s32.totalorder (!%p141_p10), %s728_s12, 1  ;;  %s738_s28 = smov (!%p141_p10), 113   ;;  %vm185_vm0 = vcmask (!%p141_p10), 130048   ;;  %v740_v31 = vmov (!%p141_p10), 0   ;;  %vm244_vm1 = vcmask (!%p141_p10), 7168   ;;  %v270_v39 = vlaneseq (!%p141_p10) }
  0x11   : > { %144 = sbr.rel (%p141_p10) target bundleno = 455 (0x1c7), region = 24  ;;  %s739_s29 = smov (!%p141_p10), 1   ;;  %186 = vst.msk [vmem:[#allocation2] sm:$0xff] (!%p141_p10), %vm185_vm0, %v740_v31  ;;  %187 = vst.msk [vmem:[#allocation2 + $0x8] sm:$0xff] (!%p141_p10), %vm185_vm0, %v740_v31  ;;  %vm254_vm2 = vcmask (!%p141_p10), 1040384  }
  0x12   : > { %v874_v50 = vand.u32 (!%p141_p10), 127, %v270_v39  ;;  %s926_s30 = sand.u32 (!%p141_p10), 1, %s720_s10   ;;  %s538_s7 = sshll.u32 (!%p141_p10), %s728_s12, 8 }
  0x13   : > { %s517_s3 = sshll.u32 (!%p141_p10), %s926_s30, 4  ;;  %s941_s20 = scalar_lea.hbm (!%p141_p10), %s1038_s2, %s538_s7 }
  0x14   : > { %vm272_vm3 = vcmp.eq.s32.totalorder (!%p141_p10), %v874_v50, 0  ;;  %s170_s4 = scalar_lea.vmem (!%p141_p10), [#allocation5], %s517_s3  ;;  %s742_s25 = smov (!%p141_p10), [#allocation5]  }
  0x15   : > { %s404_s5 = sshll.u32 (!%p141_p10), %s170_s4, 4  ;;  %s630_s26 = sshll.u32 (!%p141_p10), %s742_s25, 4  ;;  %s932_s5 = int_to_ptr.vmem [resolvable:$true] %s404_s5  ;;  %s631_s26 = int_to_ptr.vmem [resolvable:$false] %s630_s26 }
  0x16   : > { %p633_p1 = scmp.lt.s32.totalorder (!%p141_p10), %s932_s5, %s631_s26 }
  0x18   : > { %s173_s23 = scalar_select %p172_p11, %s728_s12, 1 }
  0x1a   : > { %s537_s24 = sshll.u32 %s173_s23, 6  ;;  %s375_s23 = scalar_lea.sflag [#allocation6], %s926_s30 }
  0x1b   : > { %s821_s27 = scalar_lea.vmem %s1036_s0, %s537_s24  ;;  %s626_s24 = scalar_lea.vmem %s932_s5, 256 }
  0x1c   : > { %v190_v0 = vld [vmem:[%s821_s27 + $0x10] sm:$0xff]  ;;  %v188_v1 = vld [vmem:[%s821_s27] sm:$0xff]  ;;  %v195_v2 = vld [vmem:[%s821_s27 + $0x38] sm:$0xff]  ;;  %p627_p12 = scmp.ne.s32.totalorder %s932_s5, %s626_s24 }
  0x1d   : > { %v198_v3 = vmul.f32 256.0, %v190_v0  ;;  %v196_v4 = vmul.f32 256.0, %v188_v1  ;;  %v203_v5 = vmul.f32 256.0, %v195_v2  ;;  %v189_v6 = vld [vmem:[%s821_s27 + $0x8] sm:$0xff]  ;;  %v191_v16 = vld [vmem:[%s821_s27 + $0x18] sm:$0xff]  ;;  %v192_v18 = vld [vmem:[%s821_s27 + $0x20] sm:$0xff] }
  0x1e   : > { %v197_v7 = vmul.f32 256.0, %v189_v6  ;;  %v199_v17 = vmul.f32 256.0, %v191_v16  ;;  %v200_v20 = vmul.f32 256.0, %v192_v18  ;;  %v193_v21 = vld [vmem:[%s821_s27 + $0x28] sm:$0xff]  ;;  %v194_v25 = vld [vmem:[%s821_s27 + $0x30] sm:$0xff]  ;;  %p628_p13 = pnand %p627_p12, %p801_p4  ;;  %s632_s27 = scalar_lea.vmem %s631_s26, 512 }
  0x1f   : > { %v544_v8 = vtrunc.f32 %v198_v3  ;;  %v540_v9 = vtrunc.f32 %v196_v4  ;;  %v554_v10 = vtrunc.f32 %v203_v5  ;;  %v201_v24 = vmul.f32 256.0, %v193_v21  ;;  %p634_p2 = scmp.lt.s32.totalorder %s632_s27, %s626_s24 }
  0x20   : > { %v542_v11 = vtrunc.f32 %v197_v7  ;;  %v546_v19 = vtrunc.f32 %v199_v17  ;;  %v548_v23 = vtrunc.f32 %v200_v20  ;;  %v202_v28 = vmul.f32 256.0, %v194_v25  ;;  %p629_p0 = pneg %p628_p13 }
  0x21   : > { %v827_v12 = vcvt.f32.s32 %v544_v8  ;;  %v829_v13 = vcvt.f32.s32 %v540_v9  ;;  %v835_v14 = vcvt.f32.s32 %v554_v10  ;;  %v550_v27 = vtrunc.f32 %v201_v24  ;;  %p635_p3 = por %p634_p2, %p633_p1 }
  0x22   : > { %v837_v15 = vcvt.f32.s32 %v542_v11  ;;  %v547_v22 = vcvt.f32.s32 %v546_v19  ;;  %v852_v26 = vcvt.f32.s32 %v548_v23  ;;  %v552_v30 = vtrunc.f32 %v202_v28 }
  0x23   : > { %216 = vrot.lane.b32.xlu1 %v827_v12, %s738_s28  ;;  %212 = vrot.lane.b32.xlu0 %v829_v13, %s738_s28  ;;  %v857_v29 = vcvt.f32.s32 %v550_v27  ;;  %p636_p5 = pnand %p635_p3, %p629_p0 }
  0x24   : > { %v864_v32 = vcvt.f32.s32 %v552_v30 }
  0x27   : > { %226 = vrot.lane.b32.xlu1 %v835_v14, %s738_s28  ;;  %214 = vrot.lane.b32.xlu0 %v837_v15, %s738_s28 }
  0x2b   : > { %230 = vrot.lane.b32.xlu1 %v837_v15, %s739_s29  ;;  %228 = vrot.lane.b32.xlu0 %v829_v13, %s739_s29 }
  0x2f   : > { %242 = vrot.lane.b32.xlu1 %v835_v14, %s739_s29  ;;  %232 = vrot.lane.b32.xlu0 %v827_v12, %s739_s29 }
  0x33   : > { %234 = vrot.lane.b32.xlu1 %v547_v22, %s739_s29  ;;  %218 = vrot.lane.b32.xlu0 %v547_v22, %s738_s28 }
  0x37   : > { %236 = vrot.lane.b32.xlu1 %v852_v26, %s739_s29  ;;  %220 = vrot.lane.b32.xlu0 %v852_v26, %s738_s28 }
  0x3b   : > { %238 = vrot.lane.b32.xlu1 %v857_v29, %s739_s29  ;;  %222 = vrot.lane.b32.xlu0 %v857_v29, %s738_s28 }
  0x3f   : > { %240 = vrot.lane.b32.xlu1 %v864_v32, %s739_s29  ;;  %224 = vrot.lane.b32.xlu0 %v864_v32, %s738_s28 }
  0x95   : > { %v217_v33 = vpop.permute.xlu1 %216  ;;  %v213_v34 = vpop.permute.xlu0 %212 }
  0x99   : > { %v227_v35 = vpop.permute.xlu1 %226  ;;  %v215_v36 = vpop.permute.xlu0 %214 }
  0x9d   : > { %v231_v37 = vpop.permute.xlu1 %230  ;;  %v229_v38 = vpop.permute.xlu0 %228 }
  0x9e   : > { %v246_v40 = vsel %vm244_vm1, %v215_v36, %v231_v37  ;;  %v245_v41 = vsel %vm244_vm1, %v213_v34, %v229_v38 }
  0x9f   : > { %v256_v48 = vrot.slane %v246_v40, 7  ;;  %v255_v49 = vrot.slane %v245_v41, 7 }
  0xa1   : > { %v243_v42 = vpop.permute.xlu1 %242  ;;  %v233_v43 = vpop.permute.xlu0 %232  ;;  %v257_v57 = vsel %vm254_vm2, %v255_v49, %v256_v48 }
  0xa2   : > { %v252_v44 = vsel %vm244_vm1, %v227_v35, %v243_v42  ;;  %v247_v45 = vsel %vm244_vm1, %v217_v33, %v233_v43  ;;  %v274_v1 = vsel %vm272_vm3, %v257_v57, %v246_v40 }
  0xa3   : > { %v253_v46 = vrot.slane %v252_v44, 7  ;;  %v258_v47 = vrot.slane %v247_v45, 7  ;;  %v282_v9 = vsub.s32 %v837_v15, %v274_v1 }
  0xa5   : > { %v235_v51 = vpop.permute.xlu1 %234  ;;  %v219_v52 = vpop.permute.xlu0 %218  ;;  %v269_v53 = vsel %vm254_vm2, %v253_v46, %v255_v49  ;;  %v259_v54 = vsel %vm254_vm2, %v256_v48, %v258_v47 }
  0xa6   : > { %v248_v55 = vsel %vm244_vm1, %v219_v52, %v235_v51  ;;  %v273_v58 = vsel %vm272_vm3, %v269_v53, %v245_v41  ;;  %v275_v59 = vsel %vm272_vm3, %v259_v54, %v247_v45  ;;  %v319_v52 = vld [vmem:[#allocation2] sm:$0xff]  ;;  %v320_v53 = vld [vmem:[#allocation2 + $0x8] sm:$0xff] }
  0xa7   : > { %v260_v56 = vrot.slane %v248_v55, 7  ;;  %v281_v3 = vsub.s32 %v829_v13, %v273_v58  ;;  %v283_v4 = vsub.s32 %v827_v12, %v275_v59 }
  0xa9   : > { %v261_v60 = vsel %vm254_vm2, %v258_v47, %v260_v56  ;;  %v237_v61 = vpop.permute.xlu1 %236  ;;  %v221_v62 = vpop.permute.xlu0 %220  ;;  %v290_v18 = vsub.s32 0, %v281_v3  ;;  %v296_v19 = vsub.s32 0, %v283_v4 }
  0xaa   : > { %v276_v63 = vsel %vm272_vm3, %v261_v60, %v248_v55  ;;  %v249_v0 = vsel %vm244_vm1, %v221_v62, %v237_v61 }
  0xab   : > { %v262_v2 = vrot.slane %v249_v0, 7  ;;  %v284_v5 = vsub.s32 %v547_v22, %v276_v63  ;;  %v293_v22 = vsub.s32 0, %v282_v9  ;;  %v521_v28 = vmin.u32 %v290_v18, %v281_v3 }
  0xad   : > { %v263_v6 = vsel %vm254_vm2, %v260_v56, %v262_v2  ;;  %v239_v7 = vpop.permute.xlu1 %238  ;;  %v223_v8 = vpop.permute.xlu0 %222  ;;  %v299_v13 = vsub.s32 0, %v284_v5  ;;  %v522_v35 = vmin.u32 %v293_v22, %v282_v9 }
  0xae   : > { %v277_v10 = vsel %vm272_vm3, %v263_v6, %v249_v0  ;;  %v250_v11 = vsel %vm244_vm1, %v223_v8, %v239_v7  ;;  %v741_v7 = vmov 0.0  }
  0xaf   : > { %v285_v16 = vsub.s32 %v852_v26, %v277_v10  ;;  %v264_v17 = vrot.slane %v250_v11, 7  ;;  %v523_v26 = vmin.u32 %v296_v19, %v283_v4  ;;  %v524_v30 = vmin.u32 %v299_v13, %v284_v5 }
  0xb1   : > { %v265_v12 = vsel %vm254_vm2, %v262_v2, %v264_v17  ;;  %v241_v20 = vpop.permute.xlu1 %240  ;;  %v225_v21 = vpop.permute.xlu0 %224  ;;  %v302_v24 = vsub.s32 0, %v285_v16  ;;  %v313_v42 = vadd.s32 %v523_v26, %v521_v28  ;;  %v314_v43 = vadd.s32 %v524_v30, %v522_v35 }
  0xb2   : > { %v278_v23 = vsel %vm272_vm3, %v265_v12, %v250_v11  ;;  %v251_v15 = vsel %vm244_vm1, %v225_v21, %v241_v20 }
  0xb3   : > { %v286_v25 = vsub.s32 %v857_v29, %v278_v23  ;;  %v266_v27 = vrot.slane %v251_v15, 7  ;;  %v525_v38 = vmin.u32 %v302_v24, %v285_v16 }
  0xb5   : > { %v305_v31 = vsub.s32 0, %v286_v25  ;;  %v267_v33 = vsel %vm254_vm2, %v264_v17, %v266_v27  ;;  %v268_v34 = vsel %vm254_vm2, %v266_v27, %v253_v46  ;;  %v315_v48 = vadd.s32 %v525_v38, %v313_v42 }
  0xb6   : > { %v279_v36 = vsel %vm272_vm3, %v267_v33, %v251_v15  ;;  %v280_v37 = vsel %vm272_vm3, %v268_v34, %v252_v44 }
  0xb7   : > { %v526_v40 = vmin.u32 %v305_v31, %v286_v25  ;;  %v287_v29 = vsub.s32 %v864_v32, %v279_v36  ;;  %v288_v41 = vsub.s32 %v835_v14, %v280_v37  ;;  %v334_v14 = vshrl.u32 %v270_v39, 7 }
  0xb9   : > { %v308_v45 = vsub.s32 0, %v287_v29  ;;  %v311_v47 = vsub.s32 0, %v288_v41  ;;  %v316_v49 = vadd.s32 %v526_v40, %v314_v43  ;;  %vm336_vm4 = vcmp.eq.s32.totalorder %v334_v14, 0 }
  0xba   : > { %vm338_vm5 = vmand %vm336_vm4, %vm272_vm3 }
  0xbb   : > { %v527_v46 = vmin.u32 %v308_v45, %v287_v29  ;;  %v528_v51 = vmin.u32 %v311_v47, %v288_v41 }
  0xbd   : > { %v317_v54 = vadd.s32 %v527_v46, %v315_v48  ;;  %v318_v55 = vadd.s32 %v528_v51, %v316_v49 }
  0xbf   : > { %v321_v56 = vadd.s32 %v319_v52, %v317_v54  ;;  %v322_v44 = vadd.s32 %v320_v53, %v318_v55 }
  0xc1   : > { %324 = vst.msk [vmem:[#allocation2] sm:$0xff] %vm185_vm0, %v321_v56  ;;  %325 = vst.msk [vmem:[#allocation2 + $0x8] sm:$0xff] %vm185_vm0, %v322_v44 }
  0xc8   : > { %v329_v32 = vld [vmem:[#allocation2] sm:$0xff]  ;;  %v330_v57 = vld [vmem:[#allocation2 + $0x8] sm:$0xff] }
  0xc9   : > { %v331_v58 = vcvt.s32.f32 %v329_v32  ;;  %v917_v59 = vcvt.s32.f32 %v330_v57 }
  0xcb   : > { %v919_v60 = vsel %vm338_vm5, 0.0, %v331_v58  ;;  %v343_v61 = vsel %vm185_vm0, %v917_v59, -inf }
  0xcc   : > { %v342_v62 = vsel %vm185_vm0, %v919_v60, -inf }
  0xcd   : > { %v344_v39 = vmax.f32 %v342_v62, %v343_v61 }
  0xcf   : > { %345 = vmax.xlane.f32.xlu0 %v344_v39 }
 0x15c   : > { %v346_v63 = vpop.xlane.xlu0 %345 }
 0x15d   : > { %v347_v0 = vrot.slane %v346_v63, 4 }
 0x15f   : > { %v348_v1 = vmax.f32 %v346_v63, %v347_v0 }
 0x161   : > { %v349_v50 = vrot.slane %v348_v1, 2 }
 0x163   : > { %v350_v2 = vmax.f32 %v348_v1, %v349_v50 }
 0x165   : > { %v351_v3 = vrot.slane %v350_v2, 1 }
 0x167   : > { %v352_v4 = vmax.f32 %v350_v2, %v351_v3 }
 0x169   : > { %556 = vpush %v352_v4 }
 0x19a   : > { %s557_s6 = spop %556 }
 0x19b   : > { %s354_s8 = sadd.f32 1e-12, %s557_s6  ;;  %s361_s15 = smul.f32 0.0, %s557_s6 }
 0x19d   : > { %v355_v5 = vstv %s354_s8  ;;  %v362_v6 = vstv %s361_s15 }
 0x19e   : > { %624 = vrcp.f32 %v355_v5  ;;  %vm363_vm6 = vcmp.gt.f32.partialorder %v919_v60, %v362_v6  ;;  %vm364_vm7 = vcmp.gt.f32.partialorder %v917_v59, %v362_v6 }
 0x19f   : > { %v365_v8 = vsel %vm363_vm6, 1.0, %v741_v7  ;;  %v366_v9 = vsel %vm364_vm7, 1.0, %v741_v7 }
 0x1a0   : > { %367 = vst.msk [vmem:[%s170_s4] sm:$0xff] %vm185_vm0, %v365_v8  ;;  %368 = vst.msk [vmem:[%s170_s4 + $0x8] sm:$0xff] %vm185_vm0, %v366_v9 }
 0x1a1   : > { %639 = shalt.err (!%p636_p5)
}
 0x1a2   : > { %s640_s28 = scalar_lea.hbm %s941_s20, 256  ;;  %s644_s6 = scalar_lea.hbm %s1038_s2, 512 }
 0x1a3   : > { %p641_p6 = scmp.ne.s32.totalorder %s941_s20, %s640_s28  ;;  %p645_p10 = scmp.lt.u32.totalorder %s941_s20, %s1038_s2 }
 0x1a4   : > { %p646_p11 = scmp.lt.u32.totalorder %s644_s6, %s640_s28  ;;  %p648_p13 = scmp.lt.u32.totalorder %s640_s28, %s941_s20 }
 0x1a5   : > { %p642_p7 = pnand %p641_p6, %p801_p4 }
 0x1a6   : > { %p647_p12 = por %p646_p11, %p645_p10 }
 0x1a7   : > { %p643_p9 = pneg %p642_p7 }
 0x1a8   : > { %p649_p0 = por %p648_p13, %p647_p12 }
 0x1aa   : > { %p650_p1 = pnand %p649_p0, %p643_p9 }
 0x1ac   : > { %653 = shalt.err (!%p650_p1)
}
 0x1ad   : > { %s743_s16 = smov 128   ;;  %s744_s18 = smov 8   ;;  %v625_v10 = vpop.eup %624 }
 0x1ae   : > { %559 = dma.vmem_to_hbm [thread:$0]  (%p801_p4), %s932_s5, 256, %s941_s20, %s375_s23, %s743_s16, %s743_s16, %s744_s18   ;;  %v357_v11 = vmul.f32 %v625_v10, %v919_v60  ;;  %v358_v16 = vmul.f32 %v625_v10, %v917_v59 }
 0x1af   : > { %s163_s24 = scalar_lea.vmem [#allocation3], %s517_s3  ;;  %s981_s28 = scalar_lea.hbm %s1037_s1, %s538_s7 }
 0x1b0   : > { %s388_s25 = sshll.u32 %s163_s24, 4  ;;  %359 = vst.msk [vmem:[%s163_s24] sm:$0xff] %vm185_vm0, %v357_v11  ;;  %360 = vst.msk [vmem:[%s163_s24 + $0x8] sm:$0xff] %vm185_vm0, %v358_v16  ;;  %s370_s3 = scalar_lea.sflag [#allocation4], %s926_s30  ;;  %s983_s25 = int_to_ptr.vmem [resolvable:$true] %s388_s25 }
 0x1b1   : > { %s654_s5 = scalar_lea.vmem %s983_s25, 256  ;;  %s745_s12 = smov [#allocation3]  }
 0x1b2   : > { %p655_p2 = scmp.ne.s32.totalorder %s983_s25, %s654_s5  ;;  %s658_s20 = sshll.u32 %s745_s12, 4  ;;  %s659_s20 = int_to_ptr.vmem [resolvable:$false] %s658_s20 }
 0x1b3   : > { %s660_s7 = scalar_lea.vmem %s659_s20, 512  ;;  %p661_p6 = scmp.lt.s32.totalorder %s983_s25, %s659_s20 }
 0x1b4   : > { %p656_p3 = pnand %p655_p2, %p801_p4  ;;  %p662_p7 = scmp.lt.s32.totalorder %s660_s7, %s654_s5 }
 0x1b6   : > { %p657_p5 = pneg %p656_p3  ;;  %p663_p9 = por %p662_p7, %p661_p6 }
 0x1b8   : > { %p664_p10 = pnand %p663_p9, %p657_p5 }
 0x1ba   : > { %667 = shalt.err (!%p664_p10)
}
 0x1bb   : > { %s668_s23 = scalar_lea.hbm %s981_s28, 256  ;;  %s672_s6 = scalar_lea.hbm %s1037_s1, 512 }
 0x1bc   : > { %p669_p11 = scmp.ne.s32.totalorder %s981_s28, %s668_s23  ;;  %p673_p0 = scmp.lt.u32.totalorder %s981_s28, %s1037_s1 }
 0x1bd   : > { %p674_p1 = scmp.lt.u32.totalorder %s672_s6, %s668_s23  ;;  %p676_p3 = scmp.lt.u32.totalorder %s668_s23, %s981_s28 }
 0x1be   : > { %p670_p12 = pnand %p669_p11, %p801_p4 }
 0x1bf   : > { %p675_p2 = por %p674_p1, %p673_p0 }
 0x1c0   : > { %p671_p13 = pneg %p670_p12 }
 0x1c1   : > { %p677_p5 = por %p676_p3, %p675_p2 }
 0x1c3   : > { %p678_p6 = pnand %p677_p5, %p671_p13 }
 0x1c5   : > { %681 = shalt.err (!%p678_p6)
}
 0x1c6   : > { %558 = dma.vmem_to_hbm [thread:$0]  (%p801_p4), %s983_s25, 256, %s981_s28, %s370_s3, %s743_s16, %s743_s16, %s744_s18  }
 0x1c7 PF: > { %p569_p7 = scmp.ge.s32.totalorder %s736_s14, 2  ;;  %s419_s24 = sand.u32 1, %s716_s9  }
 0x1c8   : > { %s420_s26 = scalar_lea.sflag [#allocation4], %s419_s24 }
 0x1c9   : > { %p563_p9 = pnand %p569_p7, %p808_p8 }
 0x1cb   : > { %707 = dma.done.wait (!%p563_p9), %s420_s26, 256  }
 0x1cc   : > { %709 = vsyncadd (!%p563_p9), %s420_s26, 4294967040  ;;  %s429_s19 = scalar_lea.sflag [#allocation6], %s419_s24 }
 0x1cd   : > { %711 = dma.done.wait (!%p563_p9), %s429_s19, 256  }
 0x1ce   : > { %713 = vsyncadd (!%p563_p9), %s429_s19, 4294967040  ;;  %s19_s14 = sadd.s32 1, %s736_s14   ;;  %s1041_s9 = smov %s720_s10 }
 0x1cf   : > { %p16_p10 = scmp.ge.s32.totalorder %s19_s14, 4   ;;  %s1042_s10 = smov %s724_s11 }
 0x1d0   : > { %s1043_s11 = smov %s814_s22  ;;  %s1044_s12 = smov %s732_s13 }
 0x1d1   : > { %s1045_s13 = smov %s1047_s17  ;;  %18 = sbr.rel (!%p16_p10) target bundleno = 6 (0x6), region = 84 }
 0x1d8   :  { %434 = vsyncpa [#allocation4], 1 }
 0x1d9   :  { %436 = vsyncpa [#allocation4 + $0x1], 1 }
 0x1da   :  { %437 = vsyncpa [#allocation6], 1 }
 0x1db   :  { %439 = vsyncpa [#allocation6 + $0x1], 1 }

</bundles_post_ra>
